<compile_context>
chip_gen: v6e
topology: v6e:2x2x1
jax: 0.10.0
libtpu: 0.0.40
codegen_flags: <defaults>
</compile_context>

<pallas_src>
import math

import jax
import jax.numpy as jnp
from jax.experimental import pallas as pl
from jax.experimental.pallas import tpu as pltpu

_LANE = 128


def _round_up(x, m):
    return ((x + m - 1) // m) * m


# ---------------------------------------------------------------------------
# Fused kernel: out0/out1 = Linear2(SiLU(Linear1(x[..., None])))
# ---------------------------------------------------------------------------

def _real2complex_kernel(c_ref, x_ref, o0_ref, o1_ref):
    # Coefficient layout in SMEM (see wrapper):
    #  c[0]=W1[0,0]  c[1]=W1[1,0]  c[2]=b1[0]  c[3]=b1[1]
    #  c[4]=W2[0,0]  c[5]=W2[0,1]  c[6]=W2[1,0]  c[7]=W2[1,1]
    #  c[8]=b2[0]    c[9]=b2[1]
    x = x_ref[...].astype(jnp.float32)

    w1_0, w1_1 = c_ref[0], c_ref[1]
    b1_0, b1_1 = c_ref[2], c_ref[3]
    w2_00, w2_01 = c_ref[4], c_ref[5]
    w2_10, w2_11 = c_ref[6], c_ref[7]
    b2_0, b2_1 = c_ref[8], c_ref[9]

    # linear1 (1 -> 2): h_k = x * W1[k,0] + b1[k]
    h0 = x * w1_0 + b1_0
    h1 = x * w1_1 + b1_1

    # SiLU: h * sigmoid(h).  exp runs on the EUP slot; kernel stays HBM-bound
    # with ample VALU slack.
    s0 = h0 * (1.0 / (1.0 + jnp.exp(-h0)))
    s1 = h1 * (1.0 / (1.0 + jnp.exp(-h1)))

    # linear2 (2 -> 2): out_j = sum_k s_k * W2[j,k] + b2[j]
    o0_ref[...] = (s0 * w2_00 + s1 * w2_01 + b2_0).astype(o0_ref.dtype)
    o1_ref[...] = (s0 * w2_10 + s1 * w2_11 + b2_1).astype(o1_ref.dtype)


def real2complex_forward(X, params, *, block_rows=1024):
    """Pallas implementation of Real2Complex.forward.  Returns shape X.shape + (2,)."""
    w1 = params["w1"].astype(jnp.float32)   # (2, 1)  -- nn.Linear(1, 2).weight
    b1 = params["b1"].astype(jnp.float32)   # (2,)
    w2 = params["w2"].astype(jnp.float32)   # (2, 2)  -- nn.Linear(2, 2).weight
    b2 = params["b2"].astype(jnp.float32)   # (2,)
    coefs = jnp.concatenate(
        [w1.reshape(-1), b1.reshape(-1), w2.reshape(-1), b2.reshape(-1)]
    ).astype(jnp.float32)                   # (10,) scalars -> SMEM

    orig_shape = X.shape
    out_dtype = X.dtype
    n = int(X.size)

    # Lane-dense (rows, 128) slab in X's native dtype.  Only the lane tail is
    # padded (and only when numel % 128 != 0); rows are left ragged and the
    # last (possibly partial) row tile is handled by Pallas.
    rows = max(pl.cdiv(n, _LANE), 1)
    x_flat = X.reshape(-1)
    lane_tail = rows * _LANE - n
    if lane_tail:
        x_flat = jnp.pad(x_flat, (0, lane_tail))
    x2d = x_flat.reshape(rows, _LANE)

    # Sublane packing granularity depends on dtype width (f32:8, bf16:16, i8:32).
    itemsize = jnp.dtype(out_dtype).itemsize
    align = {4: 8, 2: 16, 1: 32}.get(itemsize, 8)

    if rows <= align:
        tr = rows                                   # full-extent block, no divisibility constraint
    else:
        # Cap at ~half the rows so the grid has >= 2 steps and both
        # TensorCores on v7x get work; keep sublane alignment.
        half = _round_up(pl.cdiv(rows, 2), align)
        tr = min(_round_up(block_rows, align), half)
    num_tiles = pl.cdiv(rows, tr)

    tile = pl.BlockSpec((tr, _LANE), lambda i: (i, 0))
    out0, out1 = pl.pallas_call(
        _real2complex_kernel,
        grid=(num_tiles,),
        in_specs=[
            pl.BlockSpec(memory_space=pltpu.MemorySpace.SMEM),  # coefficients
            tile,                                               # x slab
        ],
        out_specs=(tile, tile),
        out_shape=(
            jax.ShapeDtypeStruct((rows, _LANE), out_dtype),
            jax.ShapeDtypeStruct((rows, _LANE), out_dtype),
        ),
        compiler_params=pltpu.CompilerParams(
            dimension_semantics=("parallel",),   # shards tiles across TCs on v7x
        ),
    )(coefs, x2d)

    # TODO(synk): move this channel interleave into the kernel (lane-dense
    # (tr, 256) output) once a guaranteed Mosaic lane-zip lowering is available;
    # for now it is a single fused XLA stack pass.
    out = jnp.stack([out0.reshape(-1)[:n], out1.reshape(-1)[:n]], axis=-1)
    return out.reshape(*orig_shape, 2)


# ---------------------------------------------------------------------------
# Pure-JAX reference (mirrors the PyTorch module exactly) for verification
# ---------------------------------------------------------------------------

def reference_forward(X, params):
    xe = X[..., None]                                   # unsqueeze(-1)
    h = xe @ params["w1"].T + params["b1"]              # nn.Linear(1, 2)
    s = h * jax.nn.sigmoid(h)                           # F.silu
    return s @ params["w2"].T + params["b2"]            # nn.Linear(2, 2)


# ---------------------------------------------------------------------------
# Deterministic parameter init (PyTorch nn.Linear default: U(-1/sqrt(fan_in), ...))
# ---------------------------------------------------------------------------

def init_params(key):
    k1, k2, k3, k4 = jax.random.split(key, 4)
    bound1 = 1.0 / math.sqrt(1.0)
    bound2 = 1.0 / math.sqrt(2.0)
    return {
        "w1": jax.random.uniform(k1, (2, 1), jnp.float32, -bound1, bound1),
        "b1": jax.random.uniform(k2, (2,), jnp.float32, -bound1, bound1),
        "w2": jax.random.uniform(k3, (2, 2), jnp.float32, -bound2, bound2),
        "b2": jax.random.uniform(k4, (2,), jnp.float32, -bound2, bound2),
    }


if __name__ == "__main__":
    B, S, D = 2, 8, 32     # small shapes; forward works for any input shape

    key = jax.random.PRNGKey(0)
    k_x, k_p = jax.random.split(key)
    X = jax.random.normal(k_x, (B, S, D), dtype=jnp.float32)
    params = init_params(k_p)

    out = jax.block_until_ready(real2complex_forward(X, params))
    ref = jax.block_until_ready(reference_forward(X, params))

    assert out.shape == (B, S, D, 2), out.shape
    assert jnp.allclose(out, ref, atol=1e-5, rtol=1e-5), float(jnp.max(jnp.abs(out - ref)))

    print("KERNEL_OK")
</pallas_src>

<mosaic_0001>
module attributes {stable_mosaic.version = 11 : i64} {
  func.func @_real2complex_kernel(%arg0: i32, %arg1: memref<10xf32, #tpu.memory_space<smem>>, %arg2: memref<4x128xf32, #tpu.memory_space<vmem>>, %arg3: memref<4x128xf32, #tpu.memory_space<vmem>>, %arg4: memref<4x128xf32, #tpu.memory_space<vmem>>) attributes {dimension_semantics = [#tpu.dimension_semantics<parallel>], iteration_bounds = array<i64: 1>, scalar_prefetch = 0 : i64, scratch_operands = 0 : i64, tpu.core_type = #tpu.core_type<tc>, window_params = [{transform_indices = @transform_0, window_bounds = array<i64: 10>}, {transform_indices = @transform_1, window_bounds = array<i64: 4, 128>}, {transform_indices = @transform_2, window_bounds = array<i64: 4, 128>}, {transform_indices = @transform_3, window_bounds = array<i64: 4, 128>}]} {
    %c0 = arith.constant 0 : index
    %c0_0 = arith.constant 0 : index
    %0 = vector.load %arg2[%c0, %c0_0] : memref<4x128xf32, #tpu.memory_space<vmem>>, vector<4x128xf32>
    %c0_1 = arith.constant 0 : index
    %1 = memref.load %arg1[%c0_1] : memref<10xf32, #tpu.memory_space<smem>>
    %c1 = arith.constant 1 : index
    %2 = memref.load %arg1[%c1] : memref<10xf32, #tpu.memory_space<smem>>
    %c2 = arith.constant 2 : index
    %3 = memref.load %arg1[%c2] : memref<10xf32, #tpu.memory_space<smem>>
    %c3 = arith.constant 3 : index
    %4 = memref.load %arg1[%c3] : memref<10xf32, #tpu.memory_space<smem>>
    %c4 = arith.constant 4 : index
    %5 = memref.load %arg1[%c4] : memref<10xf32, #tpu.memory_space<smem>>
    %c5 = arith.constant 5 : index
    %6 = memref.load %arg1[%c5] : memref<10xf32, #tpu.memory_space<smem>>
    %c6 = arith.constant 6 : index
    %7 = memref.load %arg1[%c6] : memref<10xf32, #tpu.memory_space<smem>>
    %c7 = arith.constant 7 : index
    %8 = memref.load %arg1[%c7] : memref<10xf32, #tpu.memory_space<smem>>
    %c8 = arith.constant 8 : index
    %9 = memref.load %arg1[%c8] : memref<10xf32, #tpu.memory_space<smem>>
    %c9 = arith.constant 9 : index
    %10 = memref.load %arg1[%c9] : memref<10xf32, #tpu.memory_space<smem>>
    %11 = vector.broadcast %1 : f32 to vector<4x128xf32>
    %12 = arith.mulf %0, %11 : vector<4x128xf32>
    %13 = vector.broadcast %3 : f32 to vector<4x128xf32>
    %14 = arith.addf %12, %13 : vector<4x128xf32>
    %15 = vector.broadcast %2 : f32 to vector<4x128xf32>
    %16 = arith.mulf %0, %15 : vector<4x128xf32>
    %17 = vector.broadcast %4 : f32 to vector<4x128xf32>
    %18 = arith.addf %16, %17 : vector<4x128xf32>
    %cst = arith.constant 0.000000e+00 : f32
    %19 = vector.broadcast %cst : f32 to vector<4x128xf32>
    %20 = arith.subf %19, %14 : vector<4x128xf32>
    %21 = math.exp %20 : vector<4x128xf32>
    %cst_2 = arith.constant 1.000000e+00 : f32
    %22 = vector.broadcast %cst_2 : f32 to vector<4x128xf32>
    %23 = arith.addf %22, %21 : vector<4x128xf32>
    %cst_3 = arith.constant 1.000000e+00 : f32
    %24 = vector.broadcast %cst_3 : f32 to vector<4x128xf32>
    %25 = arith.divf %24, %23 : vector<4x128xf32>
    %26 = arith.mulf %14, %25 : vector<4x128xf32>
    %cst_4 = arith.constant 0.000000e+00 : f32
    %27 = vector.broadcast %cst_4 : f32 to vector<4x128xf32>
    %28 = arith.subf %27, %18 : vector<4x128xf32>
    %29 = math.exp %28 : vector<4x128xf32>
    %cst_5 = arith.constant 1.000000e+00 : f32
    %30 = vector.broadcast %cst_5 : f32 to vector<4x128xf32>
    %31 = arith.addf %30, %29 : vector<4x128xf32>
    %cst_6 = arith.constant 1.000000e+00 : f32
    %32 = vector.broadcast %cst_6 : f32 to vector<4x128xf32>
    %33 = arith.divf %32, %31 : vector<4x128xf32>
    %34 = arith.mulf %18, %33 : vector<4x128xf32>
    %35 = vector.broadcast %5 : f32 to vector<4x128xf32>
    %36 = arith.mulf %26, %35 : vector<4x128xf32>
    %37 = vector.broadcast %6 : f32 to vector<4x128xf32>
    %38 = arith.mulf %34, %37 : vector<4x128xf32>
    %39 = arith.addf %36, %38 : vector<4x128xf32>
    %40 = vector.broadcast %9 : f32 to vector<4x128xf32>
    %41 = arith.addf %39, %40 : vector<4x128xf32>
    %c0_7 = arith.constant 0 : index
    %c0_8 = arith.constant 0 : index
    %42 = vector.load %arg3[%c0_7, %c0_8] : memref<4x128xf32, #tpu.memory_space<vmem>>, vector<4x128xf32>
    tpu.vector_store %arg3[%c0_7, %c0_8], %41 {strides = array<i32>} : memref<4x128xf32, #tpu.memory_space<vmem>>, vector<4x128xf32>,
    %43 = vector.broadcast %7 : f32 to vector<4x128xf32>
    %44 = arith.mulf %26, %43 : vector<4x128xf32>
    %45 = vector.broadcast %8 : f32 to vector<4x128xf32>
    %46 = arith.mulf %34, %45 : vector<4x128xf32>
    %47 = arith.addf %44, %46 : vector<4x128xf32>
    %48 = vector.broadcast %10 : f32 to vector<4x128xf32>
    %49 = arith.addf %47, %48 : vector<4x128xf32>
    %c0_9 = arith.constant 0 : index
    %c0_10 = arith.constant 0 : index
    %50 = vector.load %arg4[%c0_9, %c0_10] : memref<4x128xf32, #tpu.memory_space<vmem>>, vector<4x128xf32>
    tpu.vector_store %arg4[%c0_9, %c0_10], %49 {strides = array<i32>} : memref<4x128xf32, #tpu.memory_space<vmem>>, vector<4x128xf32>,
    return
  }
  func.func @transform_0(%arg0: i32) -> i32 {
    %c0_i32 = arith.constant 0 : i32
    %c0_i32_0 = arith.constant 0 : i32
    return %c0_i32 : i32
  }
  func.func @transform_1(%arg0: i32) -> (i32, i32) {
    %c0_i32 = arith.constant 0 : i32
    %c0_i32_0 = arith.constant 0 : i32
    return %arg0, %c0_i32 : i32, i32
  }
  func.func @transform_2(%arg0: i32) -> (i32, i32) {
    %c0_i32 = arith.constant 0 : i32
    %c0_i32_0 = arith.constant 0 : i32
    return %arg0, %c0_i32 : i32, i32
  }
  func.func @transform_3(%arg0: i32) -> (i32, i32) {
    %c0_i32 = arith.constant 0 : i32
    %c0_i32_0 = arith.constant 0 : i32
    return %arg0, %c0_i32 : i32, i32
  }
}

</mosaic_0001>

<bundles_post_ra>
// kernel: tpu_custom_call.1
= control target key start
LH: loop header
LB: loop body
LE: loop exit
PB: predicated region body
PF: predicated region fallthrough
CT: control target
= control target key end

     0   :  { %9 = vsyncpa [#allocation5], 0  ;;  %s250_s0 = inlined_call_operand.hbm [shape: f32[10], index: 0, kind: input, shape index: {}]   ;;  %s251_s1 = inlined_call_operand.hbm [shape: f32[4,128], index: 1, kind: input, shape index: {}]   ;;  %s252_s2 = inlined_call_operand.hbm [shape: f32[4,128], index: 2, kind: output, shape index: {0}]   ;;  %s253_s3 = inlined_call_operand.hbm [shape: f32[4,128], index: 3, kind: output, shape index: {1}]  }
   0x1   :  { %10 = vsyncpa [#allocation3], 0 }
   0x2   :  { %11 = vsyncpa [#allocation4], 0 }
   0x3   :  { %12 = vsyncpa [#allocation9], 0  ;;  %s214_s12 = smov [#allocation2]   ;;  %s215_s15 = smov [#allocation6]  }
   0x4   :  { %20 = dma.hbm_to_smem %s250_s0, 16, %s214_s12, [#allocation5]  }
   0x5   :  { %s27_s16 = sshll.u32 %s215_s15, 4  ;;  %s28_s16 = int_to_ptr.vmem [resolvable:$true] %s27_s16 }
   0x6   :  { %s154_s17 = scalar_lea.vmem %s28_s16, 64  ;;  %p159_p1 = scmp.lt.s32.totalorder %s28_s16, %s28_s16 }
   0x7   :  { %p155_p0 = scmp.ne.s32.totalorder %s28_s16, %s154_s17  ;;  %p160_p2 = scmp.lt.s32.totalorder %s154_s17, %s154_s17 }
   0x9   :  { %p161_p3 = por %p160_p2, %p159_p1 }
   0xb   :  { %p162_p4 = pnand %p161_p3, %p155_p0 }
   0xd   :  { %165 = shalt.err (!%p162_p4)
}
   0xe   :  { %30 = dma.hbm_to_vmem [thread:$0]  %s251_s1, 64, %s28_s16, [#allocation3]  }
   0xf   :  { %206 = dma.done.wait [#allocation5], 16  }
  0x10   :  { %207 = vsyncadd [#allocation5], 4294967280 }
  0x11   :  { %208 = dma.done.wait [#allocation3], 64  }
  0x12   :  { %209 = vsyncadd [#allocation3], 4294967232 }
  0x13   :  { %37 = sfence }
  0x14   :  { %s39_s0 = sld [smem:[#allocation2]]  ;;  %v38_v0 = vld [vmem:[#allocation6] sm:$0xf]  ;;  %s216_s28 = smov [#allocation7]  }
  0x15   :  { %s117_s20 = sld [smem:[#allocation2 + $0x1]]  ;;  %s93_s29 = sshll.u32 %s216_s28, 4  ;;  %s94_s29 = int_to_ptr.vmem [resolvable:$true] %s93_s29 }
  0x16   :  { %s118_s21 = sld [smem:[#allocation2 + $0x2]]  ;;  %s217_s30 = smov [#allocation8]  }
  0x17   :  { %s119_s22 = sld [smem:[#allocation2 + $0x3]]  ;;  %s103_s4 = sshll.u32 %s217_s30, 4  ;;  %s104_s4 = int_to_ptr.vmem [resolvable:$true] %s103_s4 }
  0x18   :  { %s120_s1 = sld [smem:[#allocation2 + $0x4]]  ;;  %s166_s5 = scalar_lea.vmem %s94_s29, 64 }
  0x19   :  { %s121_s23 = sld [smem:[#allocation2 + $0x5]]  ;;  %p167_p5 = scmp.ne.s32.totalorder %s94_s29, %s166_s5 }
  0x1a   :  { %v49_v1 = vstv %s39_s0  ;;  %s122_s24 = sld [smem:[#allocation2 + $0x6]]  ;;  %p171_p6 = scmp.lt.s32.totalorder %s94_s29, %s94_s29 }
  0x1b   :  { %v50_v2 = vmul.f32 %v49_v1, %v38_v0  ;;  %v53_v3 = vstv %s117_s20  ;;  %s123_s25 = sld [smem:[#allocation2 + $0x7]]  ;;  %p172_p7 = scmp.lt.s32.totalorder %s166_s5, %s166_s5 }
  0x1c   :  { %v51_v4 = vstv %s118_s21  ;;  %v54_v5 = vmul.f32 %v53_v3, %v38_v0  ;;  %s124_s26 = sld [smem:[#allocation2 + $0x8]] }
  0x1d   :  { %v52_v6 = vadd.f32 %v51_v4, %v50_v2  ;;  %v55_v7 = vstv %s119_s22  ;;  %s125_s27 = sld [smem:[#allocation2 + $0x9]]  ;;  %p173_p8 = por %p172_p7, %p171_p6 }
  0x1e   :  { %v56_v8 = vadd.f32 %v55_v7, %v54_v5  ;;  %v71_v18 = vstv %s120_s1 }
  0x1f   :  { %v57_v9 = vsub.f32 0.0, %v52_v6  ;;  %v73_v22 = vstv %s121_s23  ;;  %p174_p9 = pnand %p173_p8, %p167_p5 }
  0x20   :  { %v64_v10 = vsub.f32 0.0, %v56_v8  ;;  %v79_v19 = vstv %s122_s24 }
  0x21   :  { %v58_v11 = vmul.f32 1.442695, %v57_v9  ;;  %v81_v23 = vstv %s123_s25 }
  0x22   :  { %v65_v12 = vmul.f32 1.442695, %v64_v10  ;;  %v76_v29 = vstv %s124_s26 }
  0x23   :  { %130 = vpow2.f32 %v58_v11  ;;  %v84_v30 = vstv %s125_s27 }
  0x24   :  { %132 = vpow2.f32 %v65_v12 }
  0x30   :  { %v131_v13 = vpop.eup %130 }
  0x31   :  { %v133_v14 = vpop.eup %132  ;;  %v60_v15 = vadd.f32 1.0, %v131_v13 }
  0x32   :  { %v67_v16 = vadd.f32 1.0, %v133_v14 }
  0x33   :  { %134 = vrcp.f32 %v60_v15 }
  0x34   :  { %136 = vrcp.f32 %v67_v16 }
  0x40   :  { %v135_v17 = vpop.eup %134 }
  0x41   :  { %v137_v20 = vpop.eup %136  ;;  %v63_v21 = vmul.f32 %v135_v17, %v52_v6 }
  0x42   :  { %v70_v24 = vmul.f32 %v137_v20, %v56_v8 }
  0x43   :  { %v72_v25 = vmul.f32 %v71_v18, %v63_v21  ;;  %v80_v26 = vmul.f32 %v79_v19, %v63_v21 }
  0x44   :  { %v74_v27 = vmul.f32 %v73_v22, %v70_v24  ;;  %v82_v28 = vmul.f32 %v81_v23, %v70_v24 }
  0x46   :  { %v75_v31 = vadd.f32 %v74_v27, %v72_v25  ;;  %v83_v32 = vadd.f32 %v82_v28, %v80_v26 }
  0x48   :  { %v77_v33 = vadd.f32 %v76_v29, %v75_v31  ;;  %v85_v34 = vadd.f32 %v84_v30, %v83_v32 }
  0x4a   :  { %78 = vst [vmem:[#allocation7] sm:$0xf] %v77_v33  ;;  %86 = vst [vmem:[#allocation8] sm:$0xf] %v85_v34 }
  0x4b   :  { %177 = shalt.err (!%p174_p9)
}
  0x4c   :  { %96 = dma.vmem_to_hbm [thread:$0]  %s94_s29, 64, %s252_s2, [#allocation4]  }
  0x4d   :  { %s186_s8 = scalar_lea.vmem %s104_s4, 64  ;;  %p191_p11 = scmp.lt.s32.totalorder %s104_s4, %s104_s4 }
  0x4e   :  { %p187_p10 = scmp.ne.s32.totalorder %s104_s4, %s186_s8  ;;  %p192_p12 = scmp.lt.s32.totalorder %s186_s8, %s186_s8 }
  0x50   :  { %p193_p13 = por %p192_p12, %p191_p11 }
  0x52   :  { %p194_p0 = pnand %p193_p13, %p187_p10 }
  0x54   :  { %197 = shalt.err (!%p194_p0)
}
  0x55   :  { %106 = dma.vmem_to_hbm [thread:$0]  %s104_s4, 64, %s253_s3, [#allocation9]  }
  0x56   :  { %210 = dma.done.wait [#allocation4], 64  }
  0x57   :  { %211 = vsyncadd [#allocation4], 4294967232 }
  0x58   :  { %212 = dma.done.wait [#allocation9], 64  }
  0x59   :  { %213 = vsyncadd [#allocation9], 4294967232 }
  0x5a   :  { %113 = vsyncpa [#allocation3], 1 }
  0x5b   :  { %114 = vsyncpa [#allocation4], 1 }
  0x5c   :  { %115 = vsyncpa [#allocation9], 1 }
  0x5d   :  { %116 = vsyncpa [#allocation5], 1 }

</bundles_post_ra>
